<compile_context>
chip_gen: v7x
topology: tpu7x:2x2x1
jax: 0.10.0
libtpu: 0.0.40
codegen_flags: <defaults>
</compile_context>

<pallas_src>
import functools

import numpy as np
import jax
import jax.numpy as jnp
from jax.experimental import pallas as pl
from jax.experimental.pallas import tpu as pltpu

INPUT_DIM = 5
HIDDEN_DIM = 32
LANE = 128


def imputer_kernel(xT_ref, w1_ref, b1_ref, w2_ref, b2_ref, oT_ref, *, precision):
    # xT_ref: (in_dim, TB)   -- batch on the 128-wide lane axis (lane-dense I/O)
    # w1_ref: (hidden, in_dim), b1_ref: (hidden, 1)   [nn.Linear layout]
    # w2_ref: (in_dim, hidden), b2_ref: (in_dim, 1)
    # oT_ref: (in_dim, TB)
    h = jnp.dot(w1_ref[...], xT_ref[...],
                preferred_element_type=jnp.float32,
                precision=precision)                       # (hidden, TB), f32 acc
    h = jnp.maximum(h + b1_ref[...], 0.0)                  # bias + ReLU (VPU)
    # Hidden activations are downcast to the weight dtype (bf16 in perf mode)
    # before the second MXU matmul; accumulation stays f32.
    y = jnp.dot(w2_ref[...], h.astype(w2_ref.dtype),
                preferred_element_type=jnp.float32,
                precision=precision)                       # (in_dim, TB), f32 acc
    oT_ref[...] = (y + b2_ref[...]).astype(oT_ref.dtype)


def _imputer_pallas(xT, w1, b1, w2, b2, *, block_b, compute_dtype):
    """Core pallas_call.  xT is feature-major (in_dim, B); returns (in_dim, B)
    in compute_dtype."""
    in_dim, B = xT.shape
    hid = w1.shape[0]
    assert w1.shape == (hid, in_dim) and w2.shape == (in_dim, hid)

    # --- batch tile (lane axis inside the kernel) ----------------------------
    b_lanes = pl.cdiv(B, LANE) * LANE
    tb = max(LANE, (min(block_b, b_lanes) // LANE) * LANE)
    # v7x megacore: keep >=2 grid steps when the batch allows it so the
    # "parallel" axis can shard across both TensorCores (no-op on v5e/v6e).
    if pl.cdiv(B, tb) < 2 and b_lanes >= 2 * LANE:
        tb = max(LANE, pl.cdiv(b_lanes // 2, LANE) * LANE)
    grid = (pl.cdiv(B, tb),)          # partial edge block handled by Pallas

    prec = (jax.lax.Precision.HIGHEST
            if np.dtype(compute_dtype) == np.dtype(np.float32)
            else jax.lax.Precision.DEFAULT)

    xTc = xT.astype(compute_dtype)    # no-op if caller already provides it
    w1c = w1.astype(compute_dtype)
    w2c = w2.astype(compute_dtype)
    b1c = b1.astype(jnp.float32).reshape(hid, 1)
    b2c = b2.astype(jnp.float32).reshape(in_dim, 1)

    const = lambda i: (0, 0)   # weights/biases: same block every step -> resident
    return pl.pallas_call(
        functools.partial(imputer_kernel, precision=prec),
        out_shape=jax.ShapeDtypeStruct((in_dim, B), compute_dtype),
        grid=grid,
        in_specs=[
            pl.BlockSpec((in_dim, tb), lambda i: (0, i)),   # x stream (lane-dense)
            pl.BlockSpec((hid, in_dim), const),             # w1 (VMEM-resident)
            pl.BlockSpec((hid, 1), const),                  # b1
            pl.BlockSpec((in_dim, hid), const),             # w2
            pl.BlockSpec((in_dim, 1), const),               # b2
        ],
        out_specs=pl.BlockSpec((in_dim, tb), lambda i: (0, i)),
        compiler_params=pltpu.CompilerParams(
            dimension_semantics=("parallel",)),             # megacore-shardable
    )(xTc, w1c, b1c, w2c, b2c)


@functools.partial(jax.jit, static_argnames=("block_b", "compute_dtype"))
def imputer_forward(t, x, w1, b1, w2, b2, *, block_b=8192,
                    compute_dtype=jnp.bfloat16):
    """Forward of Imputer: fc2(relu(fc1(x))).  x: (B, in_dim) -> (B, in_dim).
    `t` is unused (signature parity with the PyTorch module)."""
    del t
    # One fused transpose+cast in, one fused transpose+cast out -- the minimum
    # layout plumbing required to keep the (B, in_dim) API of the module.
    outT = _imputer_pallas(x.T, w1, b1, w2, b2,
                           block_b=block_b, compute_dtype=compute_dtype)
    return outT.T.astype(x.dtype)


@functools.partial(jax.jit, static_argnames=("block_b", "compute_dtype"))
def imputer_forward_featmajor(t, xT, w1, b1, w2, b2, *, block_b=8192,
                              compute_dtype=jnp.bfloat16):
    """Feature-major variant: xT and the result are (in_dim, B) in
    compute_dtype -- zero wrapper layout ops for layout-aware callers."""
    del t
    return _imputer_pallas(xT, w1, b1, w2, b2,
                           block_b=block_b, compute_dtype=compute_dtype)


if __name__ == "__main__":
    key = jax.random.PRNGKey(0)
    kx, kt, k1, k2, k3, k4 = jax.random.split(key, 6)

    B = 1000  # matches the spec's data = torch.randn(1000, 5)
    x = jax.random.normal(kx, (B, INPUT_DIM), jnp.float32)
    t = jax.random.normal(kt, (B, 1), jnp.float32)  # unused by forward

    # nn.Linear-style init: weight (out, in), U(-1/sqrt(fan_in), 1/sqrt(fan_in)).
    bound1 = 1.0 / (INPUT_DIM ** 0.5)
    bound2 = 1.0 / (HIDDEN_DIM ** 0.5)
    w1 = jax.random.uniform(k1, (HIDDEN_DIM, INPUT_DIM), jnp.float32, -bound1, bound1)
    b1 = jax.random.uniform(k2, (HIDDEN_DIM,), jnp.float32, -bound1, bound1)
    w2 = jax.random.uniform(k3, (INPUT_DIM, HIDDEN_DIM), jnp.float32, -bound2, bound2)
    b2 = jax.random.uniform(k4, (INPUT_DIM,), jnp.float32, -bound2, bound2)

    hp = jax.lax.Precision.HIGHEST

    # --- strict f32 run: same semantics as the PyTorch module ----------------
    out_f32 = imputer_forward(t, x, w1, b1, w2, b2, compute_dtype=jnp.float32)
    jax.block_until_ready(out_f32)
    ref_f32 = jnp.maximum(jnp.dot(x, w1.T, precision=hp) + b1, 0.0)
    ref_f32 = jnp.dot(ref_f32, w2.T, precision=hp) + b2
    assert out_f32.shape == (B, INPUT_DIM) and out_f32.dtype == x.dtype
    assert jnp.allclose(out_f32, ref_f32, atol=1e-4, rtol=1e-4)

    # --- bf16-stream run (performance mode; f32 accumulation) ----------------
    out_bf16 = imputer_forward(t, x, w1, b1, w2, b2, compute_dtype=jnp.bfloat16)
    jax.block_until_ready(out_bf16)
    xb = x.astype(jnp.bfloat16).astype(jnp.float32)
    w1b = w1.astype(jnp.bfloat16).astype(jnp.float32)
    w2b = w2.astype(jnp.bfloat16).astype(jnp.float32)
    hb = jnp.maximum(jnp.dot(xb, w1b.T, precision=hp) + b1, 0.0)
    hb = hb.astype(jnp.bfloat16).astype(jnp.float32)
    ref_bf16 = jnp.dot(hb, w2b.T, precision=hp) + b2
    ref_bf16 = ref_bf16.astype(jnp.bfloat16).astype(jnp.float32)  # kernel writes bf16
    assert out_bf16.shape == (B, INPUT_DIM) and out_bf16.dtype == x.dtype
    assert jnp.allclose(out_bf16, ref_bf16, atol=2e-2, rtol=2e-2)

    # --- feature-major path (zero wrapper layout ops) ------------------------
    outT = imputer_forward_featmajor(t, x.T, w1, b1, w2, b2,
                                     compute_dtype=jnp.bfloat16)
    jax.block_until_ready(outT)
    assert outT.shape == (INPUT_DIM, B) and outT.dtype == jnp.bfloat16
    assert jnp.allclose(outT.astype(jnp.float32).T, out_bf16, atol=2e-2, rtol=2e-2)

    print("KERNEL_OK")
</pallas_src>

<mosaic_0001>
module attributes {stable_mosaic.version = 11 : i64} {
  func.func @imputer_kernel(%arg0: i32, %arg1: memref<5x512xf32, #tpu.memory_space<vmem>>, %arg2: memref<32x5xf32, #tpu.memory_space<vmem>>, %arg3: memref<32x1xf32, #tpu.memory_space<vmem>>, %arg4: memref<5x32xf32, #tpu.memory_space<vmem>>, %arg5: memref<5x1xf32, #tpu.memory_space<vmem>>, %arg6: memref<5x512xf32, #tpu.memory_space<vmem>>) attributes {dimension_semantics = [#tpu.dimension_semantics<parallel>], iteration_bounds = array<i64: 2>, scalar_prefetch = 0 : i64, scratch_operands = 0 : i64, tpu.core_type = #tpu.core_type<tc>, window_params = [{transform_indices = @transform_0, window_bounds = array<i64: 5, 512>}, {pipeline_mode = #tpu.pipeline_mode<synchronous>, transform_indices = @transform_1, window_bounds = array<i64: 32, 5>}, {pipeline_mode = #tpu.pipeline_mode<synchronous>, transform_indices = @transform_2, window_bounds = array<i64: 32, 1>}, {pipeline_mode = #tpu.pipeline_mode<synchronous>, transform_indices = @transform_3, window_bounds = array<i64: 5, 32>}, {pipeline_mode = #tpu.pipeline_mode<synchronous>, transform_indices = @transform_4, window_bounds = array<i64: 5, 1>}, {transform_indices = @transform_5, window_bounds = array<i64: 5, 512>}]} {
    %c0 = arith.constant 0 : index
    %c0_0 = arith.constant 0 : index
    %0 = vector.load %arg2[%c0, %c0_0] : memref<32x5xf32, #tpu.memory_space<vmem>>, vector<32x5xf32>
    %c0_1 = arith.constant 0 : index
    %c0_2 = arith.constant 0 : index
    %1 = vector.load %arg1[%c0_1, %c0_2] : memref<5x512xf32, #tpu.memory_space<vmem>>, vector<5x512xf32>
    %cst = arith.constant dense<0.000000e+00> : vector<32x512xf32>
    %2 = tpu.matmul %0, %1, %cst {dimension_numbers = #tpu.dot_dimension_numbers<[1], [0], [0], [1], [0, 0, 1, 1], [], []>, precision = #tpu.contract_precision<fp32>} : vector<32x5xf32>, vector<5x512xf32>, vector<32x512xf32> -> vector<32x512xf32>
    %c0_3 = arith.constant 0 : index
    %c0_4 = arith.constant 0 : index
    %3 = vector.load %arg3[%c0_3, %c0_4] : memref<32x1xf32, #tpu.memory_space<vmem>>, vector<32x1xf32>
    %4 = vector.broadcast %3 : vector<32x1xf32> to vector<32x512xf32>
    %5 = arith.addf %2, %4 : vector<32x512xf32>
    %cst_5 = arith.constant 0.000000e+00 : f32
    %6 = vector.broadcast %cst_5 : f32 to vector<32x512xf32>
    %7 = arith.maximumf %5, %6 : vector<32x512xf32>
    %c0_6 = arith.constant 0 : index
    %c0_7 = arith.constant 0 : index
    %8 = vector.load %arg4[%c0_6, %c0_7] : memref<5x32xf32, #tpu.memory_space<vmem>>, vector<5x32xf32>
    %cst_8 = arith.constant dense<0.000000e+00> : vector<5x512xf32>
    %9 = tpu.matmul %8, %7, %cst_8 {dimension_numbers = #tpu.dot_dimension_numbers<[1], [0], [0], [1], [0, 0, 1, 1], [], []>, precision = #tpu.contract_precision<fp32>} : vector<5x32xf32>, vector<32x512xf32>, vector<5x512xf32> -> vector<5x512xf32>
    %c0_9 = arith.constant 0 : index
    %c0_10 = arith.constant 0 : index
    %10 = vector.load %arg5[%c0_9, %c0_10] : memref<5x1xf32, #tpu.memory_space<vmem>>, vector<5x1xf32>
    %11 = vector.broadcast %10 : vector<5x1xf32> to vector<5x512xf32>
    %12 = arith.addf %9, %11 : vector<5x512xf32>
    %c0_11 = arith.constant 0 : index
    %c0_12 = arith.constant 0 : index
    %13 = vector.load %arg6[%c0_11, %c0_12] : memref<5x512xf32, #tpu.memory_space<vmem>>, vector<5x512xf32>
    tpu.vector_store %arg6[%c0_11, %c0_12], %12 {strides = array<i32>} : memref<5x512xf32, #tpu.memory_space<vmem>>, vector<5x512xf32>,
    return
  }
  func.func @transform_0(%arg0: i32) -> (i32, i32) {
    %c0_i32 = arith.constant 0 : i32
    %c0_i32_0 = arith.constant 0 : i32
    return %c0_i32, %arg0 : i32, i32
  }
  func.func @transform_1(%arg0: i32) -> (i32, i32) {
    %c0_i32 = arith.constant 0 : i32
    %c0_i32_0 = arith.constant 0 : i32
    %c0_i32_1 = arith.constant 0 : i32
    return %c0_i32, %c0_i32_0 : i32, i32
  }
  func.func @transform_2(%arg0: i32) -> (i32, i32) {
    %c0_i32 = arith.constant 0 : i32
    %c0_i32_0 = arith.constant 0 : i32
    %c0_i32_1 = arith.constant 0 : i32
    return %c0_i32, %c0_i32_0 : i32, i32
  }
  func.func @transform_3(%arg0: i32) -> (i32, i32) {
    %c0_i32 = arith.constant 0 : i32
    %c0_i32_0 = arith.constant 0 : i32
    %c0_i32_1 = arith.constant 0 : i32
    return %c0_i32, %c0_i32_0 : i32, i32
  }
  func.func @transform_4(%arg0: i32) -> (i32, i32) {
    %c0_i32 = arith.constant 0 : i32
    %c0_i32_0 = arith.constant 0 : i32
    %c0_i32_1 = arith.constant 0 : i32
    return %c0_i32, %c0_i32_0 : i32, i32
  }
  func.func @transform_5(%arg0: i32) -> (i32, i32) {
    %c0_i32 = arith.constant 0 : i32
    %c0_i32_0 = arith.constant 0 : i32
    return %c0_i32, %arg0 : i32, i32
  }
}

</mosaic_0001>

<bundles_post_ra>
// kernel: imputer_forward.1
= control target key start
LH: loop header
LB: loop body
LE: loop exit
PB: predicated region body
PF: predicated region fallthrough
CT: control target
= control target key end

     0   :  { %10 = vsyncpa [#allocation3], 0  ;;  %s3628_s0 = inlined_call_operand.vmem [shape: f32[5,1000], index: 0, kind: input, shape index: {}]   ;;  %s3629_s1 = inlined_call_operand.vmem [shape: f32[32,5], index: 1, kind: input, shape index: {}]   ;;  %s3630_s2 = inlined_call_operand.vmem [shape: f32[32,1], index: 2, kind: input, shape index: {}]   ;;  %s3631_s3 = inlined_call_operand.vmem [shape: f32[5,32], index: 3, kind: input, shape index: {}]   ;;  %s3632_s4 = inlined_call_operand.vmem [shape: f32[5,1], index: 4, kind: input, shape index: {}]   ;;  %s3633_s5 = inlined_call_operand.hbm [shape: f32[5,1000], index: 5, kind: output, shape index: {}]  }
   0x1   :  { %12 = vsyncpa [#allocation3 + $0x1], 0  ;;  %s3068_s18 = smov 0   ;;  %s3070_s19 = smov 0  }
   0x2   :  { %s3072_s20 = smov 0   ;;  %s3074_s21 = smov 0  }
   0x3 LB: > { %s3089_s22 = sadd.s32 4294967295, %s3033_s21   ;;  %s2699_s23 = sadd.s32 4294967294, %s3033_s21   ;;  %s3033_s21 = sphi %s3074_s21, %s3652_s21   ;;  %s3029_s20 = sphi %s3072_s20, %s3651_s20   ;;  %s3025_s19 = sphi %s3070_s19, %s3650_s19   ;;  %s3021_s18 = sphi %s3068_s18, %s3649_s18  }
   0x4   : > { %s3093_s24 = sadd.s32 1, %s3033_s21   ;;  %s135_s25 = sadd.s32 1, %s3029_s20 }
   0x5   : > { %s132_s26 = ssub.s32 %s3033_s21, %s3093_s24  ;;  %p145_p0 = scmp.ne.s32.totalorder %s3029_s20, %s3025_s19 }
   0x6   : > { %p133_p1 = scmp.eq.s32.totalorder %s132_s26, 0  ;;  %p146_p2 = scmp.eq.s32.totalorder %s3089_s22, 1 }
   0x7   : > { %p151_p3 = scmp.ne.s32.totalorder %s3025_s19, %s3021_s18  ;;  %p152_p4 = scmp.eq.s32.totalorder %s2699_s23, 1 }
   0x8   : > { %s3104_s27 = scalar_select %p133_p1, %s3029_s20, %s135_s25  }
   0x9   : > { %p3106_p5 = por %p146_p2, %p145_p0  ;;  %p3110_p6 = por %p152_p4, %p151_p3 }
   0xa   : > { %p2702_p7 = scmp.ge.s32.totalorder %s3033_s21, 1  ;;  %p191_p8 = scmp.lt.s32.totalorder %s3033_s21, 3 }
   0xc   : > { %p192_p9 = pnand %p2702_p7, %p191_p8 }
   0xd   : > { %s2704_s30 = sshll.u32 (!%p192_p9), %s3089_s22, 2  ;;  %v226_v0 = vld [vmem:[%s3629_s1] sm:$0xff] (!%p192_p9)  ;;  %vm258_vm0 = vcmask (!%p192_p9), 39936   ;;  %v227_v1 = vld [vmem:[%s3629_s1 + $0x8] sm:$0xff] (!%p192_p9)  ;;  %v3035_v2 = vmov (!%p192_p9), 0.0   ;;  %v228_v5 = vld [vmem:[%s3629_s1 + $0x10] sm:$0xff] (!%p192_p9) }
   0xe   : > { %195 = sbr.rel (%p192_p9) target bundleno = 626 (0x272), region = 40  ;;  %p3123_p10 = scmp.lt.s32.totalorder (!%p192_p9), %s2704_s30, 7  ;;  %350 = vmatprep.mubr.f32.mxu0 (!%p192_p9), %v3035_v2  ;;  %962 = vmatprep.mubr.f32.mxu1 (!%p192_p9), %v3035_v2  ;;  %v260_v3 = vsel (!%p192_p9), %vm258_vm0, %v226_v0, 0  ;;  %v263_v4 = vsel (!%p192_p9), %vm258_vm0, %v227_v1, 0  ;;  %v229_v6 = vld [vmem:[%s3629_s1 + $0x18] sm:$0xff] (!%p192_p9)  ;;  %v266_v9 = vsel (!%p192_p9), %vm258_vm0, %v228_v5, 0 }
   0xf   : > { %v3135_v7 = vand.u32 (!%p192_p9), 4294901760, %v260_v3  ;;  %v3137_v8 = vand.u32 (!%p192_p9), 4294901760, %v263_v4  ;;  %v269_v10 = vsel (!%p192_p9), %vm258_vm0, %v229_v6, 0  ;;  %v3036_v11 = vmov (!%p192_p9), 0   ;;  %v234_v12 = vld [vmem:[%s3630_s2] sm:$0xff] (!%p192_p9)  ;;  %v236_v15 = vld [vmem:[%s3630_s2 + $0x10] sm:$0xff] (!%p192_p9) }
  0x10   : > { %2969 = vset.pattern.permute.xlu0 (!%p192_p9), %v3036_v11  ;;  %2970 = vset.pattern.permute.xlu1 (!%p192_p9), %v3036_v11  ;;  %v3144_v13 = vand.u32 (!%p192_p9), 4294901760, %v266_v9  ;;  %v3146_v14 = vand.u32 (!%p192_p9), 4294901760, %v269_v10  ;;  %v235_v18 = vld [vmem:[%s3630_s2 + $0x8] sm:$0xff] (!%p192_p9)  ;;  %vm271_vm1 = vcmask (!%p192_p9), 1044480   ;;  %v237_v19 = vld [vmem:[%s3630_s2 + $0x18] sm:$0xff] (!%p192_p9)  ;;  %vm1531_vm2 = vcmask (!%p192_p9), 261120  }
  0x11   : > { %240 = vperm.xlu0 (!%p192_p9), %2969, %v234_v12   ;;  %v3152_v16 = vsub.f32 (!%p192_p9), %v260_v3, %v3135_v7  ;;  %v3155_v17 = vsub.f32 (!%p192_p9), %v263_v4, %v3137_v8  ;;  %250 = vperm.xlu1 (!%p192_p9), %2970, %v236_v15   ;;  %v1525_v46 = vld [vmem:[%s3632_s4] sm:$0x1f] (!%p192_p9)  ;;  %s216_s15 = sand.u32 (!%p192_p9), 1, %s3025_s19   ;;  %s2711_s17 = sshll.u32 (!%p192_p9), %s3089_s22, 9 }
  0x12   : > { %v3173_v22 = vsub.f32 (!%p192_p9), %v266_v9, %v3144_v13  ;;  %v3176_v26 = vsub.f32 (!%p192_p9), %v269_v10, %v3146_v14  ;;  %v1524_v63 = vld [vmem:[%s3631_s3] sm:$0x1f] (!%p192_p9)  ;;  %s2703_s16 = sshll.u32 (!%p192_p9), %s216_s15, 5  ;;  %s3586_s7 = scalar_lea.hbm (!%p192_p9), %s3633_s5, %s2711_s17 }
  0x13   : > { %v3167_v20 = vand.u32 (!%p192_p9), 4294901760, %v3152_v16  ;;  %v3170_v21 = vand.u32 (!%p192_p9), 4294901760, %v3155_v17  ;;  %v1533_v0 = vsel (!%p192_p9), %vm1531_vm2, %v1524_v63, 0  ;;  %s218_s23 = scalar_lea.vmem (!%p192_p9), [#allocation2], %s2703_s16  ;;  %s2626_s22 = scalar_lea.sflag (!%p192_p9), [#allocation3], %s216_s15 }
  0x14   : > { %v3195_v39 = vand.u32 (!%p192_p9), 4294901760, %v3173_v22  ;;  %v3214_v45 = vand.u32 (!%p192_p9), 4294901760, %v3176_v26  ;;  %v3342_v1 = vand.u32 (!%p192_p9), 4294901760, %v1533_v0  ;;  %s2640_s25 = sshll.u32 (!%p192_p9), %s218_s23, 4  ;;  %s3037_s9 = smov (!%p192_p9), [#allocation2]   ;;  %s3588_s25 = int_to_ptr.vmem [resolvable:$true] %s2640_s25 }
  0x15   : > { %s3654_s30 = smov (!%p3123_p10, %s2704_s30), 7  ;;  %245 = vperm.xlu0 %2969, %v235_v18   ;;  %v354_v31 = vsub.f32 %v3152_v16, %v3167_v20  ;;  %255 = vperm.xlu1 %2970, %v237_v19   ;;  %v365_v38 = vsub.f32 %v3155_v17, %v3170_v21  ;;  %s2971_s8 = scalar_lea.vmem %s3588_s25, 512 }
  0x16   : > { %s2705_s6 = sshll.u32 %s3654_s30, 3  ;;  %v376_v50 = vsub.f32 %v3173_v22, %v3195_v39  ;;  %v387_v56 = vsub.f32 %v3176_v26, %v3214_v45  ;;  %v3345_v3 = vsub.f32 %v1533_v0, %v3342_v1  ;;  %p2972_p11 = scmp.ne.s32.totalorder %s3588_s25, %s2971_s8 }
  0x17   : > { %s223_s11 = scalar_lea.vmem %s3628_s0, %s2705_s6  ;;  %v355_v37 = vand.u32 4294901760, %v354_v31  ;;  %v366_v44 = vand.u32 4294901760, %v365_v38  ;;  %s2975_s10 = sshll.u32 %s3037_s9, 4  ;;  %s2976_s10 = int_to_ptr.vmem [resolvable:$false] %s2975_s10 }
  0x18   : > { %v231_v23 = vld [vmem:[%s223_s11 + $0x8] sm:$0x1f]  ;;  %v233_v24 = vld [vmem:[%s223_s11 + $0x18] sm:$0x1f]  ;;  %v230_v25 = vld [vmem:[%s223_s11] sm:$0x1f]  ;;  %p2973_p12 = pnand %p2972_p11, %p3106_p5  ;;  %p2978_p0 = scmp.lt.s32.totalorder %s3588_s25, %s2976_s10 }
  0x19   : > { %v276_v27 = vsel %vm271_vm1, %v231_v23, 0  ;;  %v282_v28 = vsel %vm271_vm1, %v233_v24, 0  ;;  %v273_v29 = vsel %vm271_vm1, %v230_v25, 0  ;;  %v232_v30 = vld [vmem:[%s223_s11 + $0x10] sm:$0x1f]  ;;  %1528 = vperm.xlu0 %2969, %v1525_v46   ;;  %v377_v60 = vand.u32 4294901760, %v376_v50 }
  0x1a   : > { %v3183_v32 = vand.u32 4294901760, %v276_v27  ;;  %v3185_v33 = vand.u32 4294901760, %v282_v28  ;;  %v3187_v34 = vand.u32 4294901760, %v273_v29  ;;  %v279_v35 = vsel %vm271_vm1, %v232_v30, 0  ;;  %p2974_p13 = pneg %p2973_p12  ;;  %s2977_s11 = scalar_lea.vmem %s2976_s10, 1024 }
  0x1b   : > { %v3190_v36 = vand.u32 4294901760, %v279_v35  ;;  %v388_v62 = vand.u32 4294901760, %v387_v56  ;;  %p2979_p1 = scmp.lt.s32.totalorder %s2977_s11, %s2971_s8 }
  0x1c   : > { %285 = vmatprep.subr.mxu0 %v3183_v32  ;;  %897 = vmatprep.subr.mxu1 %v3185_v33  ;;  %v3200_v40 = vsub.f32 %v273_v29, %v3187_v34  ;;  %v3203_v41 = vsub.f32 %v276_v27, %v3183_v32  ;;  %v3206_v42 = vsub.f32 %v282_v28, %v3185_v33 }
  0x1d   : > { %287 = vmatpush1.msra.mxu0 %v3187_v34  ;;  %899 = vmatpush1.msra.mxu1 %v3190_v36  ;;  %v3211_v43 = vsub.f32 %v279_v35, %v3190_v36  ;;  %p2980_p2 = por %p2979_p1, %p2978_p0 }
  0x1e   : > { %356 = vmatmul.mubr.f32.vlgmr.msra.gmra.mrb[0].mxu0 %v355_v37  ;;  %968 = vmatmul.mubr.f32.vlgmr.msra.gmra.mrb[0].mxu1 %v355_v37  ;;  %v397_v47 = vand.u32 4294901760, %v3203_v41  ;;  %v1009_v48 = vand.u32 4294901760, %v3206_v42  ;;  %v403_v49 = vand.u32 4294901760, %v3200_v40 }
  0x1f   : > { %361 = vmatprep.mubr.f32.mxu0 %v3035_v2  ;;  %973 = vmatprep.mubr.f32.mxu1 %v3035_v2  ;;  %v1015_v51 = vand.u32 4294901760, %v3211_v43  ;;  %p2981_p3 = pnand %p2980_p2, %p2974_p13 }
  0x20   : > { %v398_v52 = vsub.f32 %v3203_v41, %v397_v47  ;;  %v1010_v53 = vsub.f32 %v3206_v42, %v1009_v48  ;;  %v404_v54 = vsub.f32 %v3200_v40, %v403_v49 }
  0x21   : > { %v1016_v55 = vsub.f32 %v3211_v43, %v1015_v51 }
  0x22   : > { %367 = vmatmul.mubr.f32.gmra.mrb[2].mxu0 %v366_v44  ;;  %979 = vmatmul.mubr.f32.gmra.mrb[2].mxu1 %v366_v44  ;;  %v399_v57 = vand.u32 4294901760, %v398_v52  ;;  %v1011_v58 = vand.u32 4294901760, %v1010_v53  ;;  %v405_v59 = vand.u32 4294901760, %v404_v54 }
  0x23   : > { %372 = vmatprep.mubr.f32.mxu0 %v3035_v2  ;;  %984 = vmatprep.mubr.f32.mxu1 %v3035_v2  ;;  %v1017_v61 = vand.u32 4294901760, %v1016_v55 }
  0x24   : > { %400 = vmatprep.subr.mxu0 %v399_v57  ;;  %1012 = vmatprep.subr.mxu1 %v1011_v58 }
  0x25   : > { %406 = vmatpush1.msra.mxu0 %v405_v59  ;;  %1018 = vmatpush1.msra.mxu1 %v1017_v61 }
  0x26   : > { %378 = vmatmul.mubr.f32.gmra.mrb[4].mxu0 %v377_v60  ;;  %990 = vmatmul.mubr.f32.gmra.mrb[4].mxu1 %v377_v60 }
  0x27   : > { %383 = vmatprep.mubr.f32.mxu0 %v3035_v2  ;;  %995 = vmatprep.mubr.f32.mxu1 %v3035_v2 }
  0x28   : > { %500 = vmatprep.subr.mxu0 %v3203_v41  ;;  %1112 = vmatprep.subr.mxu1 %v3206_v42 }
  0x2a   : > { %389 = vmatmul.mubr.f32.gmra.mrb[6].mxu0 %v388_v62  ;;  %1001 = vmatmul.mubr.f32.gmra.mrb[6].mxu1 %v388_v62 }
  0x2b   : > { %469 = vmatprep.mubr.f32.mxu0 %v3035_v2  ;;  %1081 = vmatprep.mubr.f32.mxu1 %v3035_v2 }
  0x2e   : > { %471 = vmatmul.mubr.f32.vlgmr.msra.gmra.mrb[0].mxu0 %v3135_v7  ;;  %1083 = vmatmul.mubr.f32.vlgmr.msra.gmra.mrb[0].mxu1 %v3135_v7 }
  0x2f   : > { %476 = vmatprep.mubr.f32.mxu0 %v3035_v2  ;;  %1088 = vmatprep.mubr.f32.mxu1 %v3035_v2 }
  0x30   : > { %503 = vmatpush1.msra.mxu0 %v3200_v40  ;;  %1115 = vmatpush1.msra.mxu1 %v3211_v43 }
  0x31   : > { %600 = vmatprep.subr.mxu0 %v3183_v32  ;;  %1212 = vmatprep.subr.mxu1 %v3185_v33 }
  0x32   : > { %478 = vmatmul.mubr.f32.gmra.mrb[2].mxu0 %v3137_v8  ;;  %1090 = vmatmul.mubr.f32.gmra.mrb[2].mxu1 %v3137_v8 }
  0x33   : > { %483 = vmatprep.mubr.f32.mxu0 %v3035_v2  ;;  %1095 = vmatprep.mubr.f32.mxu1 %v3035_v2 }
  0x36   : > { %485 = vmatmul.mubr.f32.gmra.mrb[4].mxu0 %v3144_v13  ;;  %1097 = vmatmul.mubr.f32.gmra.mrb[4].mxu1 %v3144_v13 }
  0x37   : > { %490 = vmatprep.mubr.f32.mxu0 %v3035_v2  ;;  %1102 = vmatprep.mubr.f32.mxu1 %v3035_v2 }
  0x3a   : > { %492 = vmatmul.mubr.f32.gmra.mrb[6].mxu0 %v3146_v14  ;;  %1104 = vmatmul.mubr.f32.gmra.mrb[6].mxu1 %v3146_v14 }
  0x3b   : > { %566 = vmatprep.mubr.f32.mxu0 %v3035_v2  ;;  %1178 = vmatprep.mubr.f32.mxu1 %v3035_v2 }
  0x3e   : > { %569 = vmatmul.mubr.f32.vlgmr.msra.gmra.mrb[0].mxu0 %v3152_v16  ;;  %1181 = vmatmul.mubr.f32.vlgmr.msra.gmra.mrb[0].mxu1 %v3152_v16 }
  0x3f   : > { %574 = vmatprep.mubr.f32.mxu0 %v3035_v2  ;;  %1186 = vmatprep.mubr.f32.mxu1 %v3035_v2 }
  0x40   : > { %602 = vmatpush1.msra.mxu0 %v3187_v34  ;;  %1214 = vmatpush1.msra.mxu1 %v3190_v36 }
  0x41   : > { %705 = vmatprep.subr.mxu0 %v397_v47  ;;  %1317 = vmatprep.subr.mxu1 %v1009_v48 }
  0x42   : > { %577 = vmatmul.mubr.f32.gmra.mrb[2].mxu0 %v3155_v17  ;;  %1189 = vmatmul.mubr.f32.gmra.mrb[2].mxu1 %v3155_v17 }
  0x43   : > { %582 = vmatprep.mubr.f32.mxu0 %v3035_v2  ;;  %1194 = vmatprep.mubr.f32.mxu1 %v3035_v2 }
  0x46   : > { %585 = vmatmul.mubr.f32.gmra.mrb[4].mxu0 %v3173_v22  ;;  %1197 = vmatmul.mubr.f32.gmra.mrb[4].mxu1 %v3173_v22 }
  0x47   : > { %590 = vmatprep.mubr.f32.mxu0 %v3035_v2  ;;  %1202 = vmatprep.mubr.f32.mxu1 %v3035_v2 }
  0x4a   : > { %593 = vmatmul.mubr.f32.gmra.mrb[6].mxu0 %v3176_v26  ;;  %1205 = vmatmul.mubr.f32.gmra.mrb[6].mxu1 %v3176_v26 }
  0x4b   : > { %665 = vmatprep.mubr.f32.mxu0 %v3035_v2  ;;  %1277 = vmatprep.mubr.f32.mxu1 %v3035_v2 }
  0x4e   : > { %669 = vmatmul.mubr.f32.vlgmr.msra.gmra.mrb[0].mxu0 %v3167_v20  ;;  %1281 = vmatmul.mubr.f32.vlgmr.msra.gmra.mrb[0].mxu1 %v3167_v20 }
  0x4f   : > { %674 = vmatprep.mubr.f32.mxu0 %v3035_v2  ;;  %1286 = vmatprep.mubr.f32.mxu1 %v3035_v2 }
  0x50   : > { %709 = vmatpush1.msra.mxu0 %v403_v49  ;;  %1321 = vmatpush1.msra.mxu1 %v1015_v51 }
  0x51   : > { %802 = vmatprep.subr.mxu0 %v3183_v32  ;;  %1414 = vmatprep.subr.mxu1 %v3185_v33 }
  0x52   : > { %678 = vmatmul.mubr.f32.gmra.mrb[2].mxu0 %v3170_v21  ;;  %1290 = vmatmul.mubr.f32.gmra.mrb[2].mxu1 %v3170_v21 }
  0x53   : > { %683 = vmatprep.mubr.f32.mxu0 %v3035_v2  ;;  %1295 = vmatprep.mubr.f32.mxu1 %v3035_v2 }
  0x56   : > { %687 = vmatmul.mubr.f32.gmra.mrb[4].mxu0 %v3195_v39  ;;  %1299 = vmatmul.mubr.f32.gmra.mrb[4].mxu1 %v3195_v39 }
  0x57   : > { %692 = vmatprep.mubr.f32.mxu0 %v3035_v2  ;;  %1304 = vmatprep.mubr.f32.mxu1 %v3035_v2 }
  0x5a   : > { %696 = vmatmul.mubr.f32.gmra.mrb[6].mxu0 %v3214_v45  ;;  %1308 = vmatmul.mubr.f32.gmra.mrb[6].mxu1 %v3214_v45 }
  0x5b   : > { %772 = vmatprep.mubr.f32.mxu0 %v3035_v2  ;;  %1384 = vmatprep.mubr.f32.mxu1 %v3035_v2 }
  0x5e   : > { %774 = vmatmul.mubr.f32.vlgmr.msra.gmra.mrb[0].mxu0 %v3135_v7  ;;  %1386 = vmatmul.mubr.f32.vlgmr.msra.gmra.mrb[0].mxu1 %v3135_v7 }
  0x5f   : > { %779 = vmatprep.mubr.f32.mxu0 %v3035_v2  ;;  %1391 = vmatprep.mubr.f32.mxu1 %v3035_v2 }
  0x60   : > { %804 = vmatpush1.msra.mxu0 %v3187_v34  ;;  %1416 = vmatpush1.msra.mxu1 %v3190_v36 }
  0x62   : > { %781 = vmatmul.mubr.f32.gmra.mrb[2].mxu0 %v3137_v8  ;;  %1393 = vmatmul.mubr.f32.gmra.mrb[2].mxu1 %v3137_v8 }
  0x63   : > { %786 = vmatprep.mubr.f32.mxu0 %v3035_v2  ;;  %1398 = vmatprep.mubr.f32.mxu1 %v3035_v2 }
  0x66   : > { %788 = vmatmul.mubr.f32.gmra.mrb[4].mxu0 %v3144_v13  ;;  %1400 = vmatmul.mubr.f32.gmra.mrb[4].mxu1 %v3144_v13 }
  0x67   : > { %793 = vmatprep.mubr.f32.mxu0 %v3035_v2  ;;  %1405 = vmatprep.mubr.f32.mxu1 %v3035_v2 }
  0x6a   : > { %795 = vmatmul.mubr.f32.gmra.mrb[6].mxu0 %v3146_v14  ;;  %1407 = vmatmul.mubr.f32.gmra.mrb[6].mxu1 %v3146_v14 }
  0x6b   : > { %867 = vmatprep.mubr.f32.mxu0 %v3035_v2  ;;  %1479 = vmatprep.mubr.f32.mxu1 %v3035_v2 }
  0x6e   : > { %869 = vmatmul.mubr.f32.vlgmr.msra.gmra.mrb[0].mxu0 %v3135_v7  ;;  %1481 = vmatmul.mubr.f32.vlgmr.msra.gmra.mrb[0].mxu1 %v3135_v7  ;;  %v3348_v7 = vand.u32 4294901760, %v3345_v3 }
  0x6f   : > { %874 = vmatprep.mubr.f32.mxu0 %v3035_v2  ;;  %1486 = vmatprep.mubr.f32.mxu1 %v3035_v2 }
  0x70   : > { %v1611_v21 = vsub.f32 %v3345_v3, %v3348_v7 }
  0x72   : > { %876 = vmatmul.mubr.f32.gmra.mrb[2].mxu0 %v3137_v8  ;;  %1488 = vmatmul.mubr.f32.gmra.mrb[2].mxu1 %v3137_v8  ;;  %v3373_v52 = vand.u32 4294901760, %v1611_v21 }
  0x73   : > { %881 = vmatprep.mubr.f32.mxu0 %v3035_v2  ;;  %1493 = vmatprep.mubr.f32.mxu1 %v3035_v2 }
  0x76   : > { %883 = vmatmul.mubr.f32.gmra.mrb[4].mxu0 %v3144_v13  ;;  %1495 = vmatmul.mubr.f32.gmra.mrb[4].mxu1 %v3144_v13 }
  0x77   : > { %888 = vmatprep.mubr.f32.mxu0 %v3035_v2  ;;  %1500 = vmatprep.mubr.f32.mxu1 %v3035_v2 }
  0x7a   : > { %890 = vmatmul.mubr.f32.gmra.mrb[6].mxu0 %v3146_v14  ;;  %1502 = vmatmul.mubr.f32.gmra.mrb[6].mxu1 %v3146_v14 }
  0x7b   : > { %1607 = vmatprep.mubr.f32.mxu0 %v3035_v2  ;;  %2150 = vmatprep.mubr.f32.mxu1 %v3035_v2 }
  0x90   : > { %v241_v4 = vpop.permute.xlu0 %240  ;;  %v251_v36 = vpop.permute.xlu1 %250 }
  0x94   : > { %v246_v14 = vpop.permute.xlu0 %245 }
 0x141   : > { %v870_v5 = vpop.f32.mrb[0].mxu0  ;;  %v1482_v6 = vpop.f32.mrb[0].mxu1 }
 0x142   : > { %v2808_v8 = vadd.f32 %v870_v5, %v241_v4  ;;  %v2816_v9 = vadd.f32 %v1482_v6, %v241_v4  ;;  %v872_v10 = vpop.f32.mrb[1].mxu0  ;;  %v1484_v11 = vpop.f32.mrb[1].mxu1 }
 0x143   : > { %v2809_v12 = vadd.f32 %v872_v10, %v241_v4  ;;  %v2817_v13 = vadd.f32 %v1484_v11, %v241_v4 }
 0x144   : > { %v1508_v15 = vmax.f32 %v2808_v8, 0.0  ;;  %v1510_v16 = vmax.f32 %v2816_v9, 0.0 }
 0x145   : > { %v1509_v17 = vmax.f32 %v2809_v12, 0.0  ;;  %v1511_v18 = vmax.f32 %v2817_v13, 0.0  ;;  %v877_v19 = vpop.f32.mrb[2].mxu0  ;;  %v1489_v20 = vpop.f32.mrb[2].mxu1 }
 0x146   : > { %v1537_v22 = vand.u32 4294901760, %v1508_v15  ;;  %v2080_v23 = vand.u32 4294901760, %v1510_v16  ;;  %v2810_v24 = vadd.f32 %v877_v19, %v246_v14  ;;  %v2818_v25 = vadd.f32 %v1489_v20, %v246_v14  ;;  %v879_v26 = vpop.f32.mrb[3].mxu0  ;;  %v1491_v27 = vpop.f32.mrb[3].mxu1 }
 0x147   : > { %v3352_v28 = vand.u32 4294901760, %v1509_v17  ;;  %v3354_v29 = vand.u32 4294901760, %v1511_v18  ;;  %v2811_v30 = vadd.f32 %v879_v26, %v246_v14  ;;  %v2819_v31 = vadd.f32 %v1491_v27, %v246_v14 }
 0x148   : > { %v3356_v32 = vsub.f32 %v1508_v15, %v1537_v22  ;;  %v3358_v33 = vsub.f32 %v1510_v16, %v2080_v23  ;;  %v1512_v34 = vmax.f32 %v2810_v24, 0.0  ;;  %v1514_v35 = vmax.f32 %v2818_v25, 0.0 }
 0x149   : > { %v3361_v37 = vsub.f32 %v1509_v17, %v3352_v28  ;;  %v3364_v38 = vsub.f32 %v1511_v18, %v3354_v29  ;;  %v1513_v39 = vmax.f32 %v2811_v30, 0.0  ;;  %v1515_v40 = vmax.f32 %v2819_v31, 0.0  ;;  %v884_v41 = vpop.f32.mrb[4].mxu0  ;;  %v1496_v42 = vpop.f32.mrb[4].mxu1 }
 0x14a   : > { %v1627_v43 = vand.u32 4294901760, %v3356_v32  ;;  %v2170_v44 = vand.u32 4294901760, %v3358_v33  ;;  %v1541_v45 = vand.u32 4294901760, %v1512_v34  ;;  %v2084_v46 = vand.u32 4294901760, %v1514_v35  ;;  %v886_v47 = vpop.f32.mrb[5].mxu0  ;;  %v1498_v48 = vpop.f32.mrb[5].mxu1 }
 0x14b   : > { %v1621_v49 = vand.u32 4294901760, %v3361_v37  ;;  %v3369_v50 = vand.u32 4294901760, %v1513_v39  ;;  %v3371_v51 = vand.u32 4294901760, %v1515_v40  ;;  %v2164_v0 = vand.u32 4294901760, %v3364_v38  ;;  %v256_v17 = vpop.permute.xlu1 %255 }
 0x14c   : > { %v3378_v53 = vsub.f32 %v3356_v32, %v1627_v43  ;;  %v3383_v54 = vsub.f32 %v3358_v33, %v2170_v44  ;;  %v3385_v55 = vpack.c.bf16 %v1541_v45, %v1537_v22  ;;  %v3387_v56 = vsub.f32 %v1512_v34, %v1541_v45 }
 0x14d   : > { %v3389_v57 = vpack.c.bf16 %v2084_v46, %v2080_v23  ;;  %v3391_v58 = vsub.f32 %v1514_v35, %v2084_v46  ;;  %v3394_v59 = vsub.f32 %v1513_v39, %v3369_v50  ;;  %v3397_v60 = vsub.f32 %v1515_v40, %v3371_v51  ;;  %v891_v61 = vpop.f32.mrb[6].mxu0  ;;  %v1503_v62 = vpop.f32.mrb[6].mxu1 }
 0x14e   : > { %v1629_v63 = vand.u32 4294901760, %v3378_v53  ;;  %v1639_v4 = vand.u32 4294901760, %v3387_v56  ;;  %v2812_v5 = vadd.f32 %v884_v41, %v251_v36  ;;  %v893_v6 = vpop.f32.mrb[7].mxu0  ;;  %v1505_v8 = vpop.f32.mrb[7].mxu1  ;;  %v2172_v9 = vand.u32 4294901760, %v3383_v54 }
 0x14f   : > { %v2182_v10 = vand.u32 4294901760, %v3391_v58  ;;  %v1633_v11 = vand.u32 4294901760, %v3394_v59  ;;  %v2820_v12 = vadd.f32 %v1496_v42, %v251_v36  ;;  %v2813_v15 = vadd.f32 %v886_v47, %v251_v36 }
 0x150   : > { %v3408_v13 = vsub.f32 %v3387_v56, %v1639_v4  ;;  %v1516_v14 = vmax.f32 %v2812_v5, 0.0  ;;  %v2821_v16 = vadd.f32 %v1498_v48, %v251_v36  ;;  %v2176_v18 = vand.u32 4294901760, %v3397_v60 }
 0x151   : > { %v1518_v19 = vmax.f32 %v2820_v12, 0.0  ;;  %v2814_v20 = vadd.f32 %v891_v61, %v256_v17  ;;  %v2822_v21 = vadd.f32 %v1503_v62, %v256_v17  ;;  %v2183_v22 = vsub.f32 %v3391_v58, %v2182_v10 }
 0x152   : > { %v1545_v23 = vand.u32 4294901760, %v1516_v14  ;;  %v1517_v24 = vmax.f32 %v2813_v15, 0.0  ;;  %v1519_v25 = vmax.f32 %v2821_v16, 0.0  ;;  %v1641_v26 = vand.u32 4294901760, %v3408_v13 }
 0x153   : > { %v2088_v27 = vand.u32 4294901760, %v1518_v19  ;;  %v1520_v30 = vmax.f32 %v2814_v20, 0.0  ;;  %v1522_v31 = vmax.f32 %v2822_v21, 0.0  ;;  %v2815_v39 = vadd.f32 %v893_v6, %v256_v17 }
 0x154   : > { %v3415_v34 = vsub.f32 %v1516_v14, %v1545_v23  ;;  %v1543_v35 = vand.u32 4294901760, %v1517_v24  ;;  %v2086_v36 = vand.u32 4294901760, %v1519_v25  ;;  %v2823_v45 = vadd.f32 %v1505_v8, %v256_v17 }
 0x155   : > { %v3417_v40 = vsub.f32 %v1518_v19, %v2088_v27  ;;  %v1549_v41 = vand.u32 4294901760, %v1520_v30  ;;  %v2092_v42 = vand.u32 4294901760, %v1522_v31  ;;  %v1521_v61 = vmax.f32 %v2815_v39, 0.0 }
 0x156   : > { %v3637_v46 = vand.u32 4294901760, %v3415_v34  ;;  %v3420_v47 = vsub.f32 %v1517_v24, %v1543_v35  ;;  %v3422_v48 = vsub.f32 %v1519_v25, %v2086_v36  ;;  %v2184_v6 = vand.u32 4294901760, %v2183_v22 }
 0x157   : > { %v3635_v62 = vand.u32 4294901760, %v3417_v40  ;;  %v3425_v5 = vpack.c.bf16 %v1549_v41, %v1545_v23  ;;  %v3427_v12 = vsub.f32 %v1520_v30, %v1549_v41  ;;  %v3429_v13 = vpack.c.bf16 %v2092_v42, %v2088_v27 }
 0x158   : > { %v1652_v8 = vsub.f32 %v3415_v34, %v3637_v46  ;;  %v3638_v14 = vand.u32 4294901760, %v3420_v47  ;;  %v3435_v15 = vsub.f32 %v1522_v31, %v2092_v42  ;;  %v1547_v19 = vand.u32 4294901760, %v1521_v61 }
 0x159   : > { %v2195_v16 = vsub.f32 %v3417_v40, %v3635_v62  ;;  %v3636_v17 = vand.u32 4294901760, %v3427_v12  ;;  %v1523_v20 = vmax.f32 %v2823_v45, 0.0  ;;  %v3639_v21 = vand.u32 4294901760, %v3422_v48 }
 0x15a   : > { %v3634_v22 = vand.u32 4294901760, %v3435_v15  ;;  %v3445_v23 = vpack.c.bf16 %v3369_v50, %v3352_v28  ;;  %v3449_v24 = vpack.c.bf16 %v3371_v51, %v3354_v29  ;;  %v1653_v25 = vand.u32 4294901760, %v1652_v8 }
 0x15b   : > { %v1664_v27 = vsub.f32 %v3427_v12, %v3636_v17  ;;  %v3454_v30 = vsub.f32 %v1521_v61, %v1547_v19  ;;  %v2090_v31 = vand.u32 4294901760, %v1523_v20  ;;  %v2196_v39 = vand.u32 4294901760, %v2195_v16 }
 0x15c   : > { %v2207_v41 = vsub.f32 %v3435_v15, %v3634_v22  ;;  %2713 = vmatprep.subr.bf16.mxu0 %v3445_v23  ;;  %2761 = vmatprep.subr.bf16.mxu1 %v3449_v24  ;;  %v3461_v28 = vpack.c.bf16 %v1547_v19, %v1543_v35  ;;  %v1622_v29 = vsub.f32 %v3361_v37, %v1621_v49 }
 0x15d   : > { %v1665_v50 = vand.u32 4294901760, %v1664_v27  ;;  %v1657_v51 = vand.u32 4294901760, %v3454_v30  ;;  %v3467_v42 = vsub.f32 %v1523_v20, %v2090_v31  ;;  %2715 = vmatpush1.bf16.msra.mxu0 %v3385_v55  ;;  %2763 = vmatpush1.bf16.msra.mxu1 %v3389_v57  ;;  %v3471_v45 = vpack.c.bf16 %v2090_v31, %v2086_v36 }
 0x15e   : > { %v2208_v61 = vand.u32 4294901760, %v2207_v41  ;;  %2717 = vmatprep.subr.bf16.mxu0 %v3461_v28  ;;  %v1623_v35 = vand.u32 4294901760, %v1622_v29  ;;  %v1634_v8 = vsub.f32 %v3394_v59, %v1633_v11  ;;  %v2165_v16 = vsub.f32 %v3364_v38, %v2164_v0 }
 0x15f   : > { %v2200_v19 = vand.u32 4294901760, %v3467_v42  ;;  %2765 = vmatprep.subr.bf16.mxu1 %v3471_v45  ;;  %v2177_v36 = vsub.f32 %v3397_v60, %v2176_v18  ;;  %v2722_v20 = vpack.c.bf16 %v1641_v26, %v1629_v63  ;;  %v2770_v27 = vpack.c.bf16 %v2184_v6, %v2172_v9 }
 0x160   : > { %v1635_v31 = vand.u32 4294901760, %v1634_v8  ;;  %v2166_v41 = vand.u32 4294901760, %v2165_v16  ;;  %v1646_v29 = vsub.f32 %v3420_v47, %v3638_v14  ;;  %v1658_v22 = vsub.f32 %v3454_v30, %v1657_v51 }
 0x161   : > { %2719 = vmatpush1.bf16.msra.mxu0 %v3425_v5  ;;  %2767 = vmatpush1.bf16.msra.mxu1 %v3429_v13  ;;  %v2178_v62 = vand.u32 4294901760, %v2177_v36  ;;  %v2189_v53 = vsub.f32 %v3422_v48, %v3639_v21  ;;  %v2201_v54 = vsub.f32 %v3467_v42, %v2200_v19  ;;  %v2726_v63 = vpack.c.bf16 %v1665_v50, %v1653_v25 }
 0x162   : > { %v2720_v9 = vpack.c.bf16 %v1635_v31, %v1623_v35  ;;  %v1647_v26 = vand.u32 4294901760, %v1646_v29  ;;  %v1659_v6 = vand.u32 4294901760, %v1658_v22  ;;  %v2774_v8 = vpack.c.bf16 %v2208_v61, %v2196_v39 }
 0x163   : > { %v2768_v16 = vpack.c.bf16 %v2178_v62, %v2166_v41  ;;  %v2190_v17 = vand.u32 4294901760, %v2189_v53  ;;  %v2202_v46 = vand.u32 4294901760, %v2201_v54  ;;  %v2728_v14 = vpack.c.bf16 %v3394_v59, %v3361_v37 }
 0x164   : > { %2721 = vmatprep.subr.bf16.mxu0 %v2720_v9  ;;  %1613 = vmatmul.mubr.f32.vlgmr.msra.gmra.mrb[8].mxu0 %v3373_v52  ;;  %v2724_v36 = vpack.c.bf16 %v1659_v6, %v1647_v26  ;;  %v2776_v21 = vpack.c.bf16 %v3397_v60, %v3364_v38  ;;  %v2730_v25 = vpack.c.bf16 %v3387_v56, %v3356_v32  ;;  %v3644_v59 = vand.u32 4294901760, %v3422_v48 }
 0x165   : > { %2769 = vmatprep.subr.bf16.mxu1 %v2768_v16  ;;  %2156 = vmatmul.mubr.f32.vlgmr.msra.gmra.mrb[8].mxu1 %v3373_v52  ;;  %v2772_v22 = vpack.c.bf16 %v2202_v46, %v2190_v17  ;;  %v2778_v62 = vpack.c.bf16 %v3391_v58, %v3358_v33  ;;  %v2732_v39 = vpack.c.bf16 %v3454_v30, %v3420_v47  ;;  %v3645_v32 = vand.u32 4294901760, %v3415_v34 }
 0x166   : > { %2723 = vmatpush1.bf16.msra.mxu0 %v2722_v20  ;;  %2771 = vmatpush1.bf16.msra.mxu1 %v2770_v27  ;;  %v2780_v50 = vpack.c.bf16 %v3467_v42, %v3422_v48  ;;  %v2734_v61 = vpack.c.bf16 %v3427_v12, %v3415_v34  ;;  %v2782_v35 = vpack.c.bf16 %v3435_v15, %v3417_v40  ;;  %v3646_v56 = vand.u32 4294901760, %v3427_v12 }
 0x167   : > { %2725 = vmatprep.subr.bf16.mxu0 %v2724_v36  ;;  %2773 = vmatprep.subr.bf16.mxu1 %v2772_v22  ;;  %v2744_v52 = vpack.c.bf16 %v1633_v11, %v1621_v49  ;;  %v2792_v46 = vpack.c.bf16 %v2176_v18, %v2164_v0  ;;  %v2746_v17 = vpack.c.bf16 %v1639_v4, %v1627_v43  ;;  %v3643_v49 = vand.u32 4294901760, %v3420_v47 }
 0x168   : > { %1723 = vmatprep.mubr.f32.mxu0 %v3035_v2  ;;  %2266 = vmatprep.mubr.f32.mxu1 %v3035_v2  ;;  %v2794_v37 = vpack.c.bf16 %v2182_v10, %v2170_v44  ;;  %v2796_v60 = vpack.c.bf16 %v2200_v19, %v3644_v59  ;;  %v2750_v43 = vpack.c.bf16 %v3646_v56, %v3645_v32  ;;  %v3647_v0 = vand.u32 4294901760, %v3417_v40 }
 0x169   : > { %v2748_v38 = vpack.c.bf16 %v1657_v51, %v3643_v49  ;;  %v3648_v4 = vand.u32 4294901760, %v3435_v15 }
 0x16a   : > { %2727 = vmatpush1.bf16.msra.mxu0 %v2726_v63  ;;  %2775 = vmatpush1.bf16.msra.mxu1 %v2774_v8 }
 0x16b   : > { %v2798_v11 = vpack.c.bf16 %v3648_v4, %v3647_v0  ;;  %2729 = vmatprep.subr.bf16.mxu0 %v2728_v14  ;;  %2777 = vmatprep.subr.bf16.mxu1 %v2776_v21 }
 0x16d   : > { %1725 = vmatmul.mubr.f32.vlgmr.msra.gmra.mrb[8].mxu0 %v3342_v1  ;;  %2268 = vmatmul.mubr.f32.vlgmr.msra.gmra.mrb[8].mxu1 %v3342_v1 }
 0x16e   : > { %2731 = vmatpush1.bf16.msra.mxu0 %v2730_v25  ;;  %2779 = vmatpush1.bf16.msra.mxu1 %v2778_v62 }
 0x16f   : > { %2733 = vmatprep.subr.bf16.mxu0 %v2732_v39  ;;  %2781 = vmatprep.subr.bf16.mxu1 %v2780_v50 }
 0x170   : > { %1811 = vmatprep.mubr.f32.mxu0 %v3035_v2  ;;  %2354 = vmatprep.mubr.f32.mxu1 %v3035_v2 }
 0x172   : > { %2735 = vmatpush1.bf16.msra.mxu0 %v2734_v61  ;;  %2783 = vmatpush1.bf16.msra.mxu1 %v2782_v35 }
 0x173   : > { %2737 = vmatprep.subr.bf16.mxu0 %v3445_v23  ;;  %2785 = vmatprep.subr.bf16.mxu1 %v3449_v24 }
 0x175   : > { %1814 = vmatmul.mubr.f32.vlgmr.msra.gmra.mrb[8].mxu0 %v3345_v3  ;;  %2357 = vmatmul.mubr.f32.vlgmr.msra.gmra.mrb[8].mxu1 %v3345_v3  ;;  %v1529_v3 = vpop.permute.xlu0 %1528 }
 0x176   : > { %2739 = vmatpush1.bf16.msra.mxu0 %v3385_v55  ;;  %2787 = vmatpush1.bf16.msra.mxu1 %v3389_v57 }
 0x177   : > { %2741 = vmatprep.subr.bf16.mxu0 %v3461_v28  ;;  %2789 = vmatprep.subr.bf16.mxu1 %v3471_v45 }
 0x178   : > { %1892 = vmatprep.mubr.f32.mxu0 %v3035_v2  ;;  %2435 = vmatprep.mubr.f32.mxu1 %v3035_v2 }
 0x17a   : > { %2743 = vmatpush1.bf16.msra.mxu0 %v3425_v5  ;;  %2791 = vmatpush1.bf16.msra.mxu1 %v3429_v13 }
 0x17b   : > { %2745 = vmatprep.subr.bf16.mxu0 %v2744_v52  ;;  %2793 = vmatprep.subr.bf16.mxu1 %v2792_v46 }
 0x17d   : > { %1896 = vmatmul.mubr.f32.vlgmr.msra.gmra.mrb[8].mxu0 %v3348_v7  ;;  %2439 = vmatmul.mubr.f32.vlgmr.msra.gmra.mrb[8].mxu1 %v3348_v7 }
 0x17e   : > { %2747 = vmatpush1.bf16.msra.mxu0 %v2746_v17  ;;  %2795 = vmatpush1.bf16.msra.mxu1 %v2794_v37 }
 0x17f   : > { %2749 = vmatprep.subr.bf16.mxu0 %v2748_v38  ;;  %2797 = vmatprep.subr.bf16.mxu1 %v2796_v60 }
 0x180   : > { %1990 = vmatprep.mubr.f32.mxu0 %v3035_v2  ;;  %2533 = vmatprep.mubr.f32.mxu1 %v3035_v2 }
 0x182   : > { %2751 = vmatpush1.bf16.msra.mxu0 %v2750_v43  ;;  %2799 = vmatpush1.bf16.msra.mxu1 %v2798_v11 }
 0x183   : > { %2753 = vmatprep.subr.bf16.mxu0 %v3445_v23  ;;  %2801 = vmatprep.subr.bf16.mxu1 %v3449_v24 }
 0x185   : > { %1992 = vmatmul.mubr.f32.vlgmr.msra.gmra.mrb[8].mxu0 %v3342_v1  ;;  %2535 = vmatmul.mubr.f32.vlgmr.msra.gmra.mrb[8].mxu1 %v3342_v1 }
 0x186   : > { %2755 = vmatpush1.bf16.msra.mxu0 %v3385_v55  ;;  %2803 = vmatpush1.bf16.msra.mxu1 %v3389_v57 }
 0x187   : > { %2757 = vmatprep.subr.bf16.mxu0 %v3461_v28  ;;  %2805 = vmatprep.subr.bf16.mxu1 %v3471_v45 }
 0x188   : > { %2070 = vmatprep.mubr.f32.mxu0 %v3035_v2  ;;  %2613 = vmatprep.mubr.f32.mxu1 %v3035_v2 }
 0x18a   : > { %2759 = vmatpush1.bf16.msra.mxu0 %v3425_v5  ;;  %2807 = vmatpush1.bf16.msra.mxu1 %v3429_v13 }
 0x18d   : > { %2072 = vmatmul.mubr.f32.vlgmr.msra.gmra.mrb[8].mxu0 %v3342_v1  ;;  %2615 = vmatmul.mubr.f32.vlgmr.msra.gmra.mrb[8].mxu1 %v3342_v1 }
 0x260   : > { %v2073_v7 = vpop.f32.mrb[8].mxu0  ;;  %v2616_v33 = vpop.f32.mrb[8].mxu1 }
 0x261   : > { %v2824_v44 = vadd.f32 %v2073_v7, %v1529_v3  ;;  %v2826_v55 = vadd.f32 %v2616_v33, %v1529_v3  ;;  %v2075_v2 = vpop.f32.mrb[9].mxu0  ;;  %v2618_v57 = vpop.f32.mrb[9].mxu1 }
 0x262   : > { %v2825_v58 = vadd.f32 %v2075_v2, %v1529_v3  ;;  %v2827_v10 = vadd.f32 %v2618_v57, %v1529_v3 }
 0x263   : > { %2621 = vst [vmem:[%s218_s23] sm:$0x1f] %v2824_v44  ;;  %2623 = vst [vmem:[%s218_s23 + $0x10] sm:$0x1f] %v2826_v55 }
 0x264   : > { %2622 = vst [vmem:[%s218_s23 + $0x8] sm:$0x1f] %v2825_v58  ;;  %2624 = vst [vmem:[%s218_s23 + $0x18] sm:$0x1f] %v2827_v10 }
 0x265   : > { %2984 = shalt.err (!%p2981_p3)
}
 0x266   : > { %s2985_s30 = scalar_lea.hbm %s3586_s7, 512  ;;  %s2989_s14 = scalar_lea.hbm %s3633_s5, 1024 }
 0x267   : > { %p2986_p4 = scmp.ne.s32.totalorder %s3586_s7, %s2985_s30  ;;  %p2990_p9 = scmp.lt.u32.totalorder %s3586_s7, %s3633_s5 }
 0x268   : > { %p2991_p10 = scmp.lt.u32.totalorder %s2989_s14, %s2985_s30  ;;  %p2993_p12 = scmp.lt.u32.totalorder %s2985_s30, %s3586_s7 }
 0x269   : > { %p2987_p7 = pnand %p2986_p4, %p3106_p5 }
 0x26a   : > { %p2992_p11 = por %p2991_p10, %p2990_p9 }
 0x26b   : > { %p2988_p8 = pneg %p2987_p7 }
 0x26c   : > { %p2994_p13 = por %p2993_p12, %p2992_p11 }
 0x26e   : > { %p2995_p0 = pnand %p2994_p13, %p2988_p8 }
 0x270   : > { %2998 = shalt.err (!%p2995_p0)
}
 0x271   : > { %2928 = dma.vmem_to_hbm [thread:$0]  (%p3106_p5), %s3588_s25, 512, %s3586_s7, %s2626_s22  }
 0x272 PF: > { %p2934_p1 = scmp.ge.s32.totalorder %s3033_s21, 2  ;;  %s2652_s17 = sand.u32 1, %s3021_s18  }
 0x273   : > { %s2653_s23 = scalar_lea.sflag [#allocation3], %s2652_s17 }
 0x274   : > { %p2931_p2 = pnand %p2934_p1, %p3110_p6 }
 0x276   : > { %3016 = dma.done.wait (!%p2931_p2), %s2653_s23, 512  }
 0x277   : > { %3018 = vsyncadd (!%p2931_p2), %s2653_s23, 4294966784  ;;  %p15_p3 = scmp.ge.s32.totalorder %s3093_s24, 4   ;;  %s3649_s18 = smov %s3025_s19 }
 0x278   : > { %s3650_s19 = smov %s3029_s20  ;;  %s3651_s20 = smov %s3104_s27 }
 0x279   : > { %s3652_s21 = smov %s3093_s24  ;;  %17 = sbr.rel (!%p15_p3) target bundleno = 3 (0x3), region = 75 }
 0x280   :  { %2658 = vsyncpa [#allocation3], 1 }
 0x281   :  { %2660 = vsyncpa [#allocation3 + $0x1], 1 }

</bundles_post_ra>
